<compile_context>
chip_gen: v7x
topology: tpu7x:2x2x1
jax: 0.10.0
libtpu: 0.0.40
codegen_flags: <defaults>
</compile_context>

<pallas_src>
import functools

import jax
import jax.numpy as jnp
from jax.experimental import pallas as pl
from jax.experimental.pallas import tpu as pltpu


def _gat_attention_kernel(a_dst_ref, a_src_t_ref, adj_ref, xw_heads_ref,
                          scale_ref, shift_ref, out_ref, *,
                          num_heads, out_channels):
    del out_channels  # implied by xw_heads_ref block shape
    edge = adj_ref[...] != 0                          # [T, N] bool (from int8 mask)
    a_dst = a_dst_ref[...]                            # [T, H] f32
    a_src_t = a_src_t_ref[...]                        # [H, N] f32
    neg_big = jnp.float32(-1e30)

    head_outs = []
    for h in range(num_heads):                        # static unroll over heads
        # e[i, j] = LeakyReLU(a_dst[i] + a_src[j], 0.2), masked to edges j -> i.
        e = a_dst[:, h:h + 1] + a_src_t[h:h + 1, :]                 # [T, N]
        e = jnp.where(e > 0, e, jnp.float32(0.2) * e)
        e = jnp.where(edge, e, neg_big)               # single [T, N] select per head
        e_max = jnp.max(e, axis=-1, keepdims=True)    # finite: self-loops present
        p = jnp.exp(e - e_max)                        # non-edges underflow to 0.0
        rowsum = jnp.sum(p, axis=-1, keepdims=True)   # [T, 1]
        # Unnormalised aggregation on the MXU (bf16 operands, f32 accumulation).
        agg = jnp.dot(p.astype(jnp.bfloat16), xw_heads_ref[h],
                      preferred_element_type=jnp.float32)           # [T, C_out]
        # Deferred softmax normalisation on the small [T, C_out] tile.
        head_outs.append(agg * pl.reciprocal(rowsum, approx=False))

    out = jnp.concatenate(head_outs, axis=-1)         # [T, H*C_out]
    # Dropout(0.3): identity in eval mode.
    # Fused bias + BatchNorm1d (eval): out * scale + shift.
    out = out * scale_ref[...] + shift_ref[...]
    # ELU(alpha=1).
    out_ref[...] = jnp.where(out > 0, out, jnp.exp(jnp.minimum(out, 0.0)) - 1.0)


def gat_layer_forward(x, edge_index, params, *, num_heads, out_channels,
                      tile_n=256):
    n = x.shape[0]
    f_out = num_heads * out_channels
    src, dst = edge_index[0], edge_index[1]

    # ---- Host/XLA prep (layout plumbing + shallow-K projection, per review) ----
    # Dense int8 adjacency mask adj[dst, src]; self-loops added (GATConv default).
    adj = jnp.zeros((n, n), jnp.int8).at[dst, src].set(1)
    adj = adj.at[jnp.arange(n), jnp.arange(n)].set(1)

    xw = jnp.dot(x, params["w"], preferred_element_type=jnp.float32)     # [N, F_OUT]
    xw_r = xw.reshape(n, num_heads, out_channels)
    a_src_t = jnp.einsum("nhc,hc->hn", xw_r, params["att_src"])          # [H, N]
    a_dst = jnp.einsum("nhc,hc->nh", xw_r, params["att_dst"])            # [N, H]
    xw_heads = xw_r.transpose(1, 0, 2).astype(jnp.bfloat16)              # [H, N, C]

    # Fold bias + BatchNorm1d(eval) into one scale/shift pair.
    inv_std = jax.lax.rsqrt(params["var"] + jnp.float32(1e-5))
    scale = params["gamma"] * inv_std                                     # [1, F_OUT]
    shift = (params["bias"] - params["mean"]) * scale + params["beta"]    # [1, F_OUT]

    # Row-tile over destination nodes.  int8 adjacency wants sublane tiles that
    # are multiples of 32; pad the dst dimension (zero rows are harmless: their
    # softmax degenerates to a finite uniform average and is sliced off below).
    tile_n = max(32, tile_n - tile_n % 32)
    n_pad = ((n + tile_n - 1) // tile_n) * tile_n
    if n_pad != n:
        adj = jnp.pad(adj, ((0, n_pad - n), (0, 0)))
        a_dst = jnp.pad(a_dst, ((0, n_pad - n), (0, 0)))
    grid = (n_pad // tile_n,)

    kernel = functools.partial(_gat_attention_kernel,
                               num_heads=num_heads, out_channels=out_channels)

    out = pl.pallas_call(
        kernel,
        grid=grid,
        in_specs=[
            pl.BlockSpec((tile_n, num_heads), lambda i: (i, 0)),               # a_dst
            pl.BlockSpec((num_heads, n), lambda i: (0, 0)),                    # a_src_t
            pl.BlockSpec((tile_n, n), lambda i: (i, 0)),                       # adj (int8)
            pl.BlockSpec((num_heads, n, out_channels), lambda i: (0, 0, 0)),   # xw_heads
            pl.BlockSpec((1, f_out), lambda i: (0, 0)),                        # scale
            pl.BlockSpec((1, f_out), lambda i: (0, 0)),                        # shift
        ],
        out_specs=pl.BlockSpec((tile_n, f_out), lambda i: (i, 0)),
        out_shape=jax.ShapeDtypeStruct((n_pad, f_out), jnp.float32),
        compiler_params=pltpu.CompilerParams(
            dimension_semantics=("parallel",)),
    )(a_dst, a_src_t, adj, xw_heads, scale, shift)
    return out[:n]


def gat_layer_ref(x, edge_index, params, *, num_heads, out_channels):
    """Pure-JAX f32 reference with the module's semantics."""
    n = x.shape[0]
    src, dst = edge_index[0], edge_index[1]
    adj = jnp.zeros((n, n), jnp.float32).at[dst, src].set(1.0)
    adj = adj.at[jnp.arange(n), jnp.arange(n)].set(1.0)

    xw = x @ params["w"]
    outs = []
    for h in range(num_heads):
        xwh = xw[:, h * out_channels:(h + 1) * out_channels]
        a_src = (xwh * params["att_src"][h]).sum(-1)
        a_dst = (xwh * params["att_dst"][h]).sum(-1)
        e = a_dst[:, None] + a_src[None, :]
        e = jnp.where(e > 0, e, 0.2 * e)
        e = jnp.where(adj > 0, e, -jnp.inf)
        alpha = jax.nn.softmax(e, axis=-1)
        outs.append(alpha @ xwh)
    out = jnp.concatenate(outs, -1) + params["bias"][0]
    out = (params["gamma"][0] * (out - params["mean"][0])
           / jnp.sqrt(params["var"][0] + 1e-5) + params["beta"][0])
    return jnp.where(out > 0, out, jnp.expm1(out))


if __name__ == "__main__":
    # Small, module-consistent shapes; tile_n=32 exercises a multi-tile grid.
    N, C_IN, C_OUT, HEADS, E = 80, 8, 8, 4, 240
    F_OUT = HEADS * C_OUT

    key = jax.random.PRNGKey(0)
    ks = jax.random.split(key, 9)

    x = jax.random.normal(ks[0], (N, C_IN), jnp.float32)
    src = jax.random.randint(ks[1], (E,), 0, N, jnp.int32)
    dst = jax.random.randint(ks[2], (E,), 0, N, jnp.int32)
    edge_index = jnp.stack([src, dst], axis=0)                 # [2, E]

    params = {
        # GATConv parameters
        "w": jax.random.normal(ks[3], (C_IN, F_OUT), jnp.float32) * (1.0 / C_IN ** 0.5),
        "att_src": jax.random.normal(ks[4], (HEADS, C_OUT), jnp.float32) * 0.3,
        "att_dst": jax.random.normal(ks[5], (HEADS, C_OUT), jnp.float32) * 0.3,
        "bias": jax.random.normal(ks[6], (1, F_OUT), jnp.float32) * 0.1,
        # BatchNorm1d (eval-mode running stats + affine params)
        "gamma": 1.0 + 0.1 * jax.random.normal(ks[7], (1, F_OUT), jnp.float32),
        "beta": 0.1 * jax.random.normal(ks[8], (1, F_OUT), jnp.float32),
        "mean": jnp.zeros((1, F_OUT), jnp.float32),
        "var": jnp.ones((1, F_OUT), jnp.float32),
    }

    out = gat_layer_forward(x, edge_index, params,
                            num_heads=HEADS, out_channels=C_OUT, tile_n=32)
    out = jax.block_until_ready(out)

    ref = gat_layer_ref(x, edge_index, params,
                        num_heads=HEADS, out_channels=C_OUT)
    assert out.shape == (N, F_OUT)
    # Tolerance sized for bf16 MXU operands (f32 accumulation) vs. the f32 reference.
    assert jnp.allclose(out, ref, atol=2e-2, rtol=2e-2), "mismatch vs reference"

    print("KERNEL_OK")
</pallas_src>

<mosaic_0001>
module attributes {stable_mosaic.version = 11 : i64} {
  func.func @_gat_attention_kernel(%arg0: i32, %arg1: memref<32x4xf32, #tpu.memory_space<vmem>>, %arg2: memref<4x80xf32, #tpu.memory_space<vmem>>, %arg3: memref<32x80xi8, #tpu.memory_space<vmem>>, %arg4: memref<4x80x8xbf16, #tpu.memory_space<vmem>>, %arg5: memref<1x32xf32, #tpu.memory_space<vmem>>, %arg6: memref<1x32xf32, #tpu.memory_space<vmem>>, %arg7: memref<32x32xf32, #tpu.memory_space<vmem>>) attributes {dimension_semantics = [#tpu.dimension_semantics<parallel>], iteration_bounds = array<i64: 3>, scalar_prefetch = 0 : i64, scratch_operands = 0 : i64, tpu.core_type = #tpu.core_type<tc>, window_params = [{transform_indices = @transform_0, window_bounds = array<i64: 32, 4>}, {pipeline_mode = #tpu.pipeline_mode<synchronous>, transform_indices = @transform_1, window_bounds = array<i64: 4, 80>}, {transform_indices = @transform_2, window_bounds = array<i64: 32, 80>}, {pipeline_mode = #tpu.pipeline_mode<synchronous>, transform_indices = @transform_3, window_bounds = array<i64: 4, 80, 8>}, {pipeline_mode = #tpu.pipeline_mode<synchronous>, transform_indices = @transform_4, window_bounds = array<i64: 1, 32>}, {pipeline_mode = #tpu.pipeline_mode<synchronous>, transform_indices = @transform_5, window_bounds = array<i64: 1, 32>}, {transform_indices = @transform_6, window_bounds = array<i64: 32, 32>}]} {
    %c0 = arith.constant 0 : index
    %c0_0 = arith.constant 0 : index
    %0 = vector.load %arg3[%c0, %c0_0] : memref<32x80xi8, #tpu.memory_space<vmem>>, vector<32x80xi8>
    %c0_i8 = arith.constant 0 : i8
    %1 = vector.broadcast %c0_i8 : i8 to vector<32x80xi8>
    %2 = arith.cmpi ne, %0, %1 : vector<32x80xi8>
    %c0_1 = arith.constant 0 : index
    %c0_2 = arith.constant 0 : index
    %3 = vector.load %arg1[%c0_1, %c0_2] : memref<32x4xf32, #tpu.memory_space<vmem>>, vector<32x4xf32>
    %c0_3 = arith.constant 0 : index
    %c0_4 = arith.constant 0 : index
    %4 = vector.load %arg2[%c0_3, %c0_4] : memref<4x80xf32, #tpu.memory_space<vmem>>, vector<4x80xf32>
    %5 = vector.extract_strided_slice %3 {offsets = [0, 0], sizes = [32, 1], strides = [1, 1]} : vector<32x4xf32> to vector<32x1xf32>
    %6 = vector.extract_strided_slice %4 {offsets = [0, 0], sizes = [1, 80], strides = [1, 1]} : vector<4x80xf32> to vector<1x80xf32>
    %7 = vector.broadcast %5 : vector<32x1xf32> to vector<32x80xf32>
    %8 = vector.broadcast %6 : vector<1x80xf32> to vector<32x80xf32>
    %9 = arith.addf %7, %8 : vector<32x80xf32>
    %cst = arith.constant 0.000000e+00 : f32
    %10 = vector.broadcast %cst : f32 to vector<32x80xf32>
    %11 = arith.cmpf ogt, %9, %10 : vector<32x80xf32>
    %cst_5 = arith.constant 2.000000e-01 : f32
    %12 = vector.broadcast %cst_5 : f32 to vector<32x80xf32>
    %13 = arith.mulf %12, %9 : vector<32x80xf32>
    %14 = arith.select %11, %9, %13 : vector<32x80xi1>, vector<32x80xf32>
    %cst_6 = arith.constant -1.000000e+30 : f32
    %15 = vector.broadcast %cst_6 : f32 to vector<32x80xf32>
    %16 = arith.select %2, %14, %15 : vector<32x80xi1>, vector<32x80xf32>
    %cst_7 = arith.constant dense<0xFF800000> : vector<32xf32>
    %17 = vector.multi_reduction <maximumf>, %16, %cst_7 [1] : vector<32x80xf32> to vector<32xf32>
    %18 = vector.shape_cast %17 : vector<32xf32> to vector<32x1xf32>
    %19 = vector.broadcast %18 : vector<32x1xf32> to vector<32x80xf32>
    %20 = arith.subf %16, %19 : vector<32x80xf32>
    %21 = math.exp %20 : vector<32x80xf32>
    %cst_8 = arith.constant dense<0.000000e+00> : vector<32xf32>
    %22 = vector.multi_reduction <add>, %21, %cst_8 [1] : vector<32x80xf32> to vector<32xf32>
    %23 = vector.shape_cast %22 : vector<32xf32> to vector<32x1xf32>
    %24 = arith.truncf %21 : vector<32x80xf32> to vector<32x80xbf16>
    %c0_9 = arith.constant 0 : index
    %c0_10 = arith.constant 0 : index
    %c0_11 = arith.constant 0 : index
    %25 = vector.load %arg4[%c0_9, %c0_10, %c0_11] : memref<4x80x8xbf16, #tpu.memory_space<vmem>>, vector<1x80x8xbf16>
    %26 = vector.shape_cast %25 : vector<1x80x8xbf16> to vector<80x8xbf16>
    %cst_12 = arith.constant dense<0.000000e+00> : vector<32x8xf32>
    %27 = tpu.matmul %24, %26, %cst_12 {dimension_numbers = #tpu.dot_dimension_numbers<[1], [0], [0], [1], [0, 0, 1, 1], [], []>} : vector<32x80xbf16>, vector<80x8xbf16>, vector<32x8xf32> -> vector<32x8xf32>
    %28 = tpu.reciprocal %23 : vector<32x1xf32> -> vector<32x1xf32>
    %29 = vector.broadcast %28 : vector<32x1xf32> to vector<32x8xf32>
    %30 = arith.mulf %27, %29 : vector<32x8xf32>
    %31 = vector.extract_strided_slice %3 {offsets = [0, 1], sizes = [32, 1], strides = [1, 1]} : vector<32x4xf32> to vector<32x1xf32>
    %32 = vector.extract_strided_slice %4 {offsets = [1, 0], sizes = [1, 80], strides = [1, 1]} : vector<4x80xf32> to vector<1x80xf32>
    %33 = vector.broadcast %31 : vector<32x1xf32> to vector<32x80xf32>
    %34 = vector.broadcast %32 : vector<1x80xf32> to vector<32x80xf32>
    %35 = arith.addf %33, %34 : vector<32x80xf32>
    %cst_13 = arith.constant 0.000000e+00 : f32
    %36 = vector.broadcast %cst_13 : f32 to vector<32x80xf32>
    %37 = arith.cmpf ogt, %35, %36 : vector<32x80xf32>
    %cst_14 = arith.constant 2.000000e-01 : f32
    %38 = vector.broadcast %cst_14 : f32 to vector<32x80xf32>
    %39 = arith.mulf %38, %35 : vector<32x80xf32>
    %40 = arith.select %37, %35, %39 : vector<32x80xi1>, vector<32x80xf32>
    %cst_15 = arith.constant -1.000000e+30 : f32
    %41 = vector.broadcast %cst_15 : f32 to vector<32x80xf32>
    %42 = arith.select %2, %40, %41 : vector<32x80xi1>, vector<32x80xf32>
    %cst_16 = arith.constant dense<0xFF800000> : vector<32xf32>
    %43 = vector.multi_reduction <maximumf>, %42, %cst_16 [1] : vector<32x80xf32> to vector<32xf32>
    %44 = vector.shape_cast %43 : vector<32xf32> to vector<32x1xf32>
    %45 = vector.broadcast %44 : vector<32x1xf32> to vector<32x80xf32>
    %46 = arith.subf %42, %45 : vector<32x80xf32>
    %47 = math.exp %46 : vector<32x80xf32>
    %cst_17 = arith.constant dense<0.000000e+00> : vector<32xf32>
    %48 = vector.multi_reduction <add>, %47, %cst_17 [1] : vector<32x80xf32> to vector<32xf32>
    %49 = vector.shape_cast %48 : vector<32xf32> to vector<32x1xf32>
    %50 = arith.truncf %47 : vector<32x80xf32> to vector<32x80xbf16>
    %c1 = arith.constant 1 : index
    %c0_18 = arith.constant 0 : index
    %c0_19 = arith.constant 0 : index
    %51 = vector.load %arg4[%c1, %c0_18, %c0_19] : memref<4x80x8xbf16, #tpu.memory_space<vmem>>, vector<1x80x8xbf16>
    %52 = vector.shape_cast %51 : vector<1x80x8xbf16> to vector<80x8xbf16>
    %cst_20 = arith.constant dense<0.000000e+00> : vector<32x8xf32>
    %53 = tpu.matmul %50, %52, %cst_20 {dimension_numbers = #tpu.dot_dimension_numbers<[1], [0], [0], [1], [0, 0, 1, 1], [], []>} : vector<32x80xbf16>, vector<80x8xbf16>, vector<32x8xf32> -> vector<32x8xf32>
    %54 = tpu.reciprocal %49 : vector<32x1xf32> -> vector<32x1xf32>
    %55 = vector.broadcast %54 : vector<32x1xf32> to vector<32x8xf32>
    %56 = arith.mulf %53, %55 : vector<32x8xf32>
    %57 = vector.extract_strided_slice %3 {offsets = [0, 2], sizes = [32, 1], strides = [1, 1]} : vector<32x4xf32> to vector<32x1xf32>
    %58 = vector.extract_strided_slice %4 {offsets = [2, 0], sizes = [1, 80], strides = [1, 1]} : vector<4x80xf32> to vector<1x80xf32>
    %59 = vector.broadcast %57 : vector<32x1xf32> to vector<32x80xf32>
    %60 = vector.broadcast %58 : vector<1x80xf32> to vector<32x80xf32>
    %61 = arith.addf %59, %60 : vector<32x80xf32>
    %cst_21 = arith.constant 0.000000e+00 : f32
    %62 = vector.broadcast %cst_21 : f32 to vector<32x80xf32>
    %63 = arith.cmpf ogt, %61, %62 : vector<32x80xf32>
    %cst_22 = arith.constant 2.000000e-01 : f32
    %64 = vector.broadcast %cst_22 : f32 to vector<32x80xf32>
    %65 = arith.mulf %64, %61 : vector<32x80xf32>
    %66 = arith.select %63, %61, %65 : vector<32x80xi1>, vector<32x80xf32>
    %cst_23 = arith.constant -1.000000e+30 : f32
    %67 = vector.broadcast %cst_23 : f32 to vector<32x80xf32>
    %68 = arith.select %2, %66, %67 : vector<32x80xi1>, vector<32x80xf32>
    %cst_24 = arith.constant dense<0xFF800000> : vector<32xf32>
    %69 = vector.multi_reduction <maximumf>, %68, %cst_24 [1] : vector<32x80xf32> to vector<32xf32>
    %70 = vector.shape_cast %69 : vector<32xf32> to vector<32x1xf32>
    %71 = vector.broadcast %70 : vector<32x1xf32> to vector<32x80xf32>
    %72 = arith.subf %68, %71 : vector<32x80xf32>
    %73 = math.exp %72 : vector<32x80xf32>
    %cst_25 = arith.constant dense<0.000000e+00> : vector<32xf32>
    %74 = vector.multi_reduction <add>, %73, %cst_25 [1] : vector<32x80xf32> to vector<32xf32>
    %75 = vector.shape_cast %74 : vector<32xf32> to vector<32x1xf32>
    %76 = arith.truncf %73 : vector<32x80xf32> to vector<32x80xbf16>
    %c2 = arith.constant 2 : index
    %c0_26 = arith.constant 0 : index
    %c0_27 = arith.constant 0 : index
    %77 = vector.load %arg4[%c2, %c0_26, %c0_27] : memref<4x80x8xbf16, #tpu.memory_space<vmem>>, vector<1x80x8xbf16>
    %78 = vector.shape_cast %77 : vector<1x80x8xbf16> to vector<80x8xbf16>
    %cst_28 = arith.constant dense<0.000000e+00> : vector<32x8xf32>
    %79 = tpu.matmul %76, %78, %cst_28 {dimension_numbers = #tpu.dot_dimension_numbers<[1], [0], [0], [1], [0, 0, 1, 1], [], []>} : vector<32x80xbf16>, vector<80x8xbf16>, vector<32x8xf32> -> vector<32x8xf32>
    %80 = tpu.reciprocal %75 : vector<32x1xf32> -> vector<32x1xf32>
    %81 = vector.broadcast %80 : vector<32x1xf32> to vector<32x8xf32>
    %82 = arith.mulf %79, %81 : vector<32x8xf32>
    %83 = vector.extract_strided_slice %3 {offsets = [0, 3], sizes = [32, 1], strides = [1, 1]} : vector<32x4xf32> to vector<32x1xf32>
    %84 = vector.extract_strided_slice %4 {offsets = [3, 0], sizes = [1, 80], strides = [1, 1]} : vector<4x80xf32> to vector<1x80xf32>
    %85 = vector.broadcast %83 : vector<32x1xf32> to vector<32x80xf32>
    %86 = vector.broadcast %84 : vector<1x80xf32> to vector<32x80xf32>
    %87 = arith.addf %85, %86 : vector<32x80xf32>
    %cst_29 = arith.constant 0.000000e+00 : f32
    %88 = vector.broadcast %cst_29 : f32 to vector<32x80xf32>
    %89 = arith.cmpf ogt, %87, %88 : vector<32x80xf32>
    %cst_30 = arith.constant 2.000000e-01 : f32
    %90 = vector.broadcast %cst_30 : f32 to vector<32x80xf32>
    %91 = arith.mulf %90, %87 : vector<32x80xf32>
    %92 = arith.select %89, %87, %91 : vector<32x80xi1>, vector<32x80xf32>
    %cst_31 = arith.constant -1.000000e+30 : f32
    %93 = vector.broadcast %cst_31 : f32 to vector<32x80xf32>
    %94 = arith.select %2, %92, %93 : vector<32x80xi1>, vector<32x80xf32>
    %cst_32 = arith.constant dense<0xFF800000> : vector<32xf32>
    %95 = vector.multi_reduction <maximumf>, %94, %cst_32 [1] : vector<32x80xf32> to vector<32xf32>
    %96 = vector.shape_cast %95 : vector<32xf32> to vector<32x1xf32>
    %97 = vector.broadcast %96 : vector<32x1xf32> to vector<32x80xf32>
    %98 = arith.subf %94, %97 : vector<32x80xf32>
    %99 = math.exp %98 : vector<32x80xf32>
    %cst_33 = arith.constant dense<0.000000e+00> : vector<32xf32>
    %100 = vector.multi_reduction <add>, %99, %cst_33 [1] : vector<32x80xf32> to vector<32xf32>
    %101 = vector.shape_cast %100 : vector<32xf32> to vector<32x1xf32>
    %102 = arith.truncf %99 : vector<32x80xf32> to vector<32x80xbf16>
    %c3 = arith.constant 3 : index
    %c0_34 = arith.constant 0 : index
    %c0_35 = arith.constant 0 : index
    %103 = vector.load %arg4[%c3, %c0_34, %c0_35] : memref<4x80x8xbf16, #tpu.memory_space<vmem>>, vector<1x80x8xbf16>
    %104 = vector.shape_cast %103 : vector<1x80x8xbf16> to vector<80x8xbf16>
    %cst_36 = arith.constant dense<0.000000e+00> : vector<32x8xf32>
    %105 = tpu.matmul %102, %104, %cst_36 {dimension_numbers = #tpu.dot_dimension_numbers<[1], [0], [0], [1], [0, 0, 1, 1], [], []>} : vector<32x80xbf16>, vector<80x8xbf16>, vector<32x8xf32> -> vector<32x8xf32>
    %106 = tpu.reciprocal %101 : vector<32x1xf32> -> vector<32x1xf32>
    %107 = vector.broadcast %106 : vector<32x1xf32> to vector<32x8xf32>
    %108 = arith.mulf %105, %107 : vector<32x8xf32>
    %109 = tpu.concatenate %30, %56, %82, %108 in 1 : vector<32x8xf32>, vector<32x8xf32>, vector<32x8xf32>, vector<32x8xf32> -> vector<32x32xf32>
    %c0_37 = arith.constant 0 : index
    %c0_38 = arith.constant 0 : index
    %110 = vector.load %arg5[%c0_37, %c0_38] : memref<1x32xf32, #tpu.memory_space<vmem>>, vector<1x32xf32>
    %111 = vector.broadcast %110 : vector<1x32xf32> to vector<32x32xf32>
    %112 = arith.mulf %109, %111 : vector<32x32xf32>
    %c0_39 = arith.constant 0 : index
    %c0_40 = arith.constant 0 : index
    %113 = vector.load %arg6[%c0_39, %c0_40] : memref<1x32xf32, #tpu.memory_space<vmem>>, vector<1x32xf32>
    %114 = vector.broadcast %113 : vector<1x32xf32> to vector<32x32xf32>
    %115 = arith.addf %112, %114 : vector<32x32xf32>
    %cst_41 = arith.constant 0.000000e+00 : f32
    %116 = vector.broadcast %cst_41 : f32 to vector<32x32xf32>
    %117 = arith.cmpf ogt, %115, %116 : vector<32x32xf32>
    %cst_42 = arith.constant 0.000000e+00 : f32
    %118 = vector.broadcast %cst_42 : f32 to vector<32x32xf32>
    %119 = arith.minimumf %115, %118 : vector<32x32xf32>
    %120 = math.exp %119 : vector<32x32xf32>
    %cst_43 = arith.constant 1.000000e+00 : f32
    %121 = vector.broadcast %cst_43 : f32 to vector<32x32xf32>
    %122 = arith.subf %120, %121 : vector<32x32xf32>
    %123 = arith.select %117, %115, %122 : vector<32x32xi1>, vector<32x32xf32>
    %c0_44 = arith.constant 0 : index
    %c0_45 = arith.constant 0 : index
    %124 = vector.load %arg7[%c0_44, %c0_45] : memref<32x32xf32, #tpu.memory_space<vmem>>, vector<32x32xf32>
    tpu.vector_store %arg7[%c0_44, %c0_45], %123 {strides = array<i32>} : memref<32x32xf32, #tpu.memory_space<vmem>>, vector<32x32xf32>,
    return
  }
  func.func @transform_0(%arg0: i32) -> (i32, i32) {
    %c0_i32 = arith.constant 0 : i32
    %c0_i32_0 = arith.constant 0 : i32
    return %arg0, %c0_i32 : i32, i32
  }
  func.func @transform_1(%arg0: i32) -> (i32, i32) {
    %c0_i32 = arith.constant 0 : i32
    %c0_i32_0 = arith.constant 0 : i32
    %c0_i32_1 = arith.constant 0 : i32
    return %c0_i32, %c0_i32_0 : i32, i32
  }
  func.func @transform_2(%arg0: i32) -> (i32, i32) {
    %c0_i32 = arith.constant 0 : i32
    %c0_i32_0 = arith.constant 0 : i32
    return %arg0, %c0_i32 : i32, i32
  }
  func.func @transform_3(%arg0: i32) -> (i32, i32, i32) {
    %c0_i32 = arith.constant 0 : i32
    %c0_i32_0 = arith.constant 0 : i32
    %c0_i32_1 = arith.constant 0 : i32
    %c0_i32_2 = arith.constant 0 : i32
    return %c0_i32, %c0_i32_0, %c0_i32_1 : i32, i32, i32
  }
  func.func @transform_4(%arg0: i32) -> (i32, i32) {
    %c0_i32 = arith.constant 0 : i32
    %c0_i32_0 = arith.constant 0 : i32
    %c0_i32_1 = arith.constant 0 : i32
    return %c0_i32, %c0_i32_0 : i32, i32
  }
  func.func @transform_5(%arg0: i32) -> (i32, i32) {
    %c0_i32 = arith.constant 0 : i32
    %c0_i32_0 = arith.constant 0 : i32
    %c0_i32_1 = arith.constant 0 : i32
    return %c0_i32, %c0_i32_0 : i32, i32
  }
  func.func @transform_6(%arg0: i32) -> (i32, i32) {
    %c0_i32 = arith.constant 0 : i32
    %c0_i32_0 = arith.constant 0 : i32
    return %arg0, %c0_i32 : i32, i32
  }
}

</mosaic_0001>

<bundles_post_ra>
// kernel: tpu_custom_call.1
= control target key start
LH: loop header
LB: loop body
LE: loop exit
PB: predicated region body
PF: predicated region fallthrough
CT: control target
= control target key end

     0   :  { %s1550_s21 = smov 0   ;;  %s1874_s0 = inlined_call_operand.vmem [shape: f32[96,4], index: 0, kind: input, shape index: {}]   ;;  %s1875_s1 = inlined_call_operand.vmem [shape: f32[4,80], index: 1, kind: input, shape index: {}]   ;;  %s1876_s2 = inlined_call_operand.vmem [shape: s8[96,80], index: 2, kind: input, shape index: {}]   ;;  %s1877_s3 = inlined_call_operand.vmem [shape: bf16[4,80,8], index: 3, kind: input, shape index: {}]   ;;  %s1878_s4 = inlined_call_operand.vmem [shape: f32[1,32], index: 4, kind: input, shape index: {}]   ;;  %s1879_s5 = inlined_call_operand.vmem [shape: f32[1,32], index: 5, kind: input, shape index: {}]   ;;  %s1880_s6 = inlined_call_operand.vmem [shape: f32[96,32], index: 6, kind: output, shape index: {}]  }
   0x1 LB: > { %s1556_s22 = sadd.s32 4294967295, %s1506_s21   ;;  %p1229_p0 = scmp.ge.s32.totalorder %s1506_s21, 1  ;;  %s1506_s21 = sphi %s1550_s21, %s16_s21  }
   0x2   : > { %p222_p1 = scmp.lt.s32.totalorder %s1506_s21, 4 }
   0x4   : > { %p223_p2 = pnand %p1229_p0, %p222_p1 }
   0x5   : > { %s1230_s23 = sshll.u32 (!%p223_p2), %s1556_s22, 2  ;;  %v1508_v0 = vmov (!%p223_p2), 0   ;;  %v1509_v5 = vmov (!%p223_p2), 1   ;;  %v1510_v6 = vmov (!%p223_p2), 2   ;;  %v1511_v7 = vmov (!%p223_p2), 3   ;;  %p262_p4 = scmp.lt.s32.totalorder (!%p223_p2), %s1556_s22, 2 }
   0x6   : > { %226 = sbr.rel (%p223_p2) target bundleno = 708 (0x2c4), region = 44  ;;  %1401 = vset.pattern.permute.xlu1 (!%p223_p2), %v1508_v0  ;;  %1400 = vset.pattern.permute.xlu0 (!%p223_p2), %v1508_v0  ;;  %p257_p3 = scmp.lt.s32.totalorder (!%p223_p2), %s1230_s23, 11  ;;  %v302_v13 = vlaneseq (!%p223_p2)  ;;  %v1583_v24 = vld [vmem:[%s1875_s1] sm:$0xf] (!%p223_p2)  ;;  %vm355_vm7 = vcmask (!%p223_p2), 654336  }
   0x7   : > { %v1416_v56 = vld [vmem:[%s1877_s3 + $0x40] sm:$0xff] (!%p223_p2)   ;;  %s1512_s8 = smov (!%p223_p2), 8   ;;  %s1513_s9 = smov (!%p223_p2), 16  }
   0x8   : > { %v1577_v18 = vshrl.u32 (!%p223_p2), %v302_v13, 7  ;;  %s1514_s10 = smov (!%p223_p2), 24  }
   0xa   : > { %v304_v23 = vsub.s32 (!%p223_p2), 0, %v1577_v18  ;;  %v515_v36 = vsub.s32 (!%p223_p2), 1, %v1577_v18 }
   0xc   : > { %v305_v27 = vrot.slane (!%p223_p2), %v1583_v24, %v304_v23  ;;  %v516_v49 = vrot.slane (!%p223_p2), %v1583_v24, %v515_v36 }
   0xd   : > { %s1890_s23 = smov (!%p257_p3, %s1230_s23), 11  ;;  %s1892_s22 = smov (!%p262_p4, %s1556_s22), 2 }
   0xe   : > { %s1231_s24 = sshll.u32 %s1890_s23, 3  ;;  %s1232_s28 = sshll.u32 %s1892_s22, 3 }
   0xf   : > { %s260_s27 = scalar_lea.vmem %s1874_s0, %s1231_s24  ;;  %s265_s7 = scalar_lea.vmem %s1876_s2, %s1232_s28 }
  0x10   : > { %v279_v1 = vld [vmem:[%s260_s27 + $0x10] sm:$0xff]  ;;  %v277_v2 = vld [vmem:[%s260_s27] sm:$0xff]  ;;  %v280_v3 = vld [vmem:[%s260_s27 + $0x18] sm:$0xff]  ;;  %s270_s17 = scalar_lea.vmem %s1880_s6, %s1231_s24 }
  0x11   : > { %294 = vperm.xlu1 %1401, %v279_v1   ;;  %284 = vperm.xlu0 %1400, %v277_v2   ;;  %v278_v4 = vld [vmem:[%s260_s27 + $0x8] sm:$0xff]  ;;  %v275_v8 = vld [vmem:[%s265_s7] sm:$0xff] }
  0x12   : > { %vm276_vm0 = vnez %v275_v8 }
  0x13   : > { %v322_v9 = vsel %vm276_vm0, 16843009, %v1508_v0 }
  0x14   : > { %v323_v10 = vunpack.c.0.s8 %v322_v9  ;;  %v326_v11 = vunpack.c.3.s8 %v322_v9  ;;  %v324_v12 = vunpack.c.1.s8 %v322_v9  ;;  %v325_v15 = vunpack.c.2.s8 %v322_v9 }
  0x15   : > { %299 = vperm.xlu1 %1401, %v280_v3   ;;  %289 = vperm.xlu0 %1400, %v278_v4  }
  0x16   : > { %v327_v14 = vpack.c.b16 %v323_v10, %v323_v10  ;;  %v333_v16 = vpack.c.b16 %v326_v11, %v326_v11  ;;  %v329_v17 = vpack.c.b16 %v324_v12, %v324_v12  ;;  %v331_v20 = vpack.c.b16 %v325_v15, %v325_v15 }
  0x18   : > { %v328_v19 = vpack.c.b8 %v327_v14, %v327_v14  ;;  %v334_v21 = vpack.c.b8 %v333_v16, %v333_v16  ;;  %v330_v22 = vpack.c.b8 %v329_v17, %v329_v17  ;;  %v332_v25 = vpack.c.b8 %v331_v20, %v331_v20 }
  0x19   : > { %1403 = vset.pattern.permute.xlu1 %v1509_v5  ;;  %1402 = vset.pattern.permute.xlu0 %v1509_v5 }
  0x1a   : > { %502 = vperm.xlu1 %1403, %v278_v4   ;;  %498 = vperm.xlu0 %1402, %v277_v2   ;;  %vm335_vm1 = vnez %v328_v19  ;;  %vm338_vm2 = vnez %v334_v21  ;;  %vm336_vm3 = vnez %v330_v22  ;;  %vm337_vm4 = vnez %v332_v25 }
  0x1b   : > { %v339_v26 = vsel %vm335_vm1, 16843009, %v1508_v0  ;;  %v342_v29 = vsel %vm338_vm2, 16843009, %v1508_v0  ;;  %v340_v30 = vsel %vm336_vm3, 16843009, %v1508_v0 }
  0x1c   : > { %v343_v28 = vunpack.c.0.s8 %v339_v26  ;;  %v341_v35 = vsel %vm337_vm4, 16843009, %v1508_v0  ;;  %v346_v37 = vunpack.c.0.s8 %v342_v29  ;;  %v344_v38 = vunpack.c.0.s8 %v340_v30 }
  0x1d   : > { %v345_v44 = vunpack.c.0.s8 %v341_v35  ;;  %v879_v21 = vsub.s32 3, %v1577_v18 }
  0x1e   : > { %506 = vperm.xlu1 %1403, %v279_v1   ;;  %510 = vperm.xlu0 %1402, %v280_v3   ;;  %vm1591_vm6 = vcmp.ne.s32.totalorder %v343_v28, 0  ;;  %vm1600_vm9 = vcmp.ne.s32.totalorder %v346_v37, 0  ;;  %vm1604_vm10 = vcmp.ne.s32.totalorder %v344_v38, 0 }
  0x1f   : > { %vm1610_vm13 = vcmp.ne.s32.totalorder %v345_v44, 0 }
  0x22   : > { %1404 = vset.pattern.permute.xlu1 %v1510_v6  ;;  %1405 = vset.pattern.permute.xlu0 %v1510_v6 }
  0x23   : > { %680 = vperm.xlu1 %1404, %v277_v2   ;;  %684 = vperm.xlu0 %1405, %v278_v4  }
  0x27   : > { %688 = vperm.xlu1 %1404, %v279_v1   ;;  %1406 = vset.pattern.permute.xlu0 %v1511_v7 }
  0x28   : > { %862 = vperm.xlu0 %1406, %v277_v2  }
  0x2b   : > { %692 = vperm.xlu1 %1404, %v280_v3  }
  0x2c   : > { %874 = vperm.xlu0 %1406, %v280_v3  }
  0x2f   : > { %1407 = vset.pattern.permute.xlu1 %v1511_v7 }
  0x30   : > { %866 = vperm.xlu1 %1407, %v278_v4   ;;  %v697_v4 = vsub.s32 2, %v1577_v18 }
  0x32   : > { %v698_v15 = vrot.slane %v1583_v24, %v697_v4 }
  0x34   : > { %870 = vperm.xlu1 %1407, %v279_v1  }
  0x90   : > { %v295_v31 = vpop.permute.xlu1 %294  ;;  %v285_v32 = vpop.permute.xlu0 %284 }
  0x91   : > { %v308_v33 = vadd.f32 %v305_v27, %v295_v31  ;;  %v306_v34 = vadd.f32 %v305_v27, %v285_v32  ;;  %v880_v32 = vrot.slane %v1583_v24, %v879_v21  ;;  %v1413_v21 = vld [vmem:[%s1877_s3 + $0x30] sm:$0xff]  }
  0x93   : > { %v314_v39 = vmul.f32 0.2, %v306_v34  ;;  %vm310_vm5 = vcmp.gt.f32.partialorder %v306_v34, 0.0  ;;  %v316_v41 = vmul.f32 0.2, %v308_v33  ;;  %vm312_vm8 = vcmp.gt.f32.partialorder %v308_v33, 0.0 }
  0x94   : > { %v300_v42 = vpop.permute.xlu1 %299  ;;  %v290_v43 = vpop.permute.xlu0 %289 }
  0x95   : > { %v309_v45 = vadd.f32 %v305_v27, %v300_v42  ;;  %v307_v46 = vadd.f32 %v305_v27, %v290_v43  ;;  %v318_v47 = vsel %vm310_vm5, %v306_v34, %v314_v39  ;;  %v320_v55 = vsel %vm312_vm8, %v308_v33, %v316_v41 }
  0x96   : > { %v1597_v48 = vsel %vm1591_vm6, %v318_v47, -1e+30  ;;  %v1628_v3 = vsel %vm1610_vm13, %v320_v55, -1e+30 }
  0x97   : > { %v317_v52 = vmul.f32 0.2, %v309_v45  ;;  %v315_v53 = vmul.f32 0.2, %v307_v46  ;;  %v356_v54 = vsel %vm355_vm7, %v1597_v48, -inf  ;;  %vm313_vm11 = vcmp.gt.f32.partialorder %v309_v45, 0.0 }
  0x98   : > { %357 = vmax.xlane.f32.xlu1 %v356_v54  ;;  %vm311_vm12 = vcmp.gt.f32.partialorder %v307_v46, 0.0  ;;  %v362_v13 = vsel %vm355_vm7, %v1628_v3, -inf }
  0x99   : > { %v503_v57 = vpop.permute.xlu1 %502  ;;  %v499_v58 = vpop.permute.xlu0 %498  ;;  %v321_v59 = vsel %vm313_vm11, %v309_v45, %v317_v52  ;;  %v319_v60 = vsel %vm311_vm12, %v307_v46, %v315_v53  ;;  %v1408_v46 = vld [vmem:[%s1877_s3] sm:$0xff]  }
  0x9a   : > { %v518_v61 = vadd.f32 %v516_v49, %v503_v57  ;;  %v517_v62 = vadd.f32 %v516_v49, %v499_v58  ;;  %v1616_v63 = vsel %vm1600_vm9, %v321_v59, -1e+30  ;;  %v1620_v0 = vsel %vm1604_vm10, %v319_v60, -1e+30  ;;  %1329 = vmatprep.subr.bf16.mxu0 %v1408_v46 }
  0x9b   : > { %v365_v1 = vsel %vm355_vm7, %v1616_v63, -inf  ;;  %v359_v2 = vsel %vm355_vm7, %v1620_v0, -inf  ;;  %1330 = vmatpush3.bf16.msra.mxu0 %v1408_v46 }
  0x9c   : > { %v526_v5 = vmul.f32 0.2, %v518_v61  ;;  %v525_v6 = vmul.f32 0.2, %v517_v62  ;;  %366 = vmax.xlane.f32.xlu1 %v365_v1  ;;  %360 = vmax.xlane.f32.xlu0 %v359_v2  ;;  %vm522_vm14 = vcmp.gt.f32.partialorder %v518_v61, 0.0  ;;  %vm521_vm15 = vcmp.gt.f32.partialorder %v517_v62, 0.0 }
  0x9d   : > { %v507_v7 = vpop.permute.xlu1 %506  ;;  %v511_v8 = vpop.permute.xlu0 %510 }
  0x9e   : > { %v519_v9 = vadd.f32 %v516_v49, %v507_v7  ;;  %v520_v10 = vadd.f32 %v516_v49, %v511_v8  ;;  %v530_v11 = vsel %vm522_vm14, %v518_v61, %v526_v5  ;;  %v529_v12 = vsel %vm521_vm15, %v517_v62, %v525_v6  ;;  %v1409_v62 = vld [vmem:[%s1877_s3 + $0x8] sm:$0xff]  }
  0x9f   : > { %v1635_v14 = vsel %vm1604_vm10, %v530_v11, -1e+30  ;;  %v1640_v16 = vsel %vm1591_vm6, %v529_v12, -1e+30  ;;  %1331 = vmatprep.subr.bf16.mxu0 %v1409_v62 }
  0xa0   : > { %v527_v17 = vmul.f32 0.2, %v519_v9  ;;  %v528_v19 = vmul.f32 0.2, %v520_v10  ;;  %363 = vmax.xlane.f32.xlu0 %v362_v13  ;;  %v540_v20 = vsel %vm355_vm7, %v1635_v14, -inf  ;;  %vm524_vm0 = vcmp.gt.f32.partialorder %v520_v10, 0.0  ;;  %1332 = vmatpush3.bf16.msra.mxu0 %v1409_v62 }
  0xa1   : > { %541 = vmax.xlane.f32.xlu1 %v540_v20  ;;  %vm523_vm1 = vcmp.gt.f32.partialorder %v519_v9, 0.0  ;;  %v537_v29 = vsel %vm355_vm7, %v1640_v16, -inf  ;;  %v1412_v20 = vld [vmem:[%s1877_s3 + $0x18] sm:$0xff]  }
  0xa2   : > { %v681_v22 = vpop.permute.xlu1 %680  ;;  %v685_v23 = vpop.permute.xlu0 %684  ;;  %v532_v25 = vsel %vm524_vm0, %v520_v10, %v528_v19  ;;  %v531_v26 = vsel %vm523_vm1, %v519_v9, %v527_v17  ;;  %v1410_v9 = vld [vmem:[%s1877_s3 + $0x10] sm:$0xff]   ;;  %v1411_v10 = vld [vmem:[%s1877_s3 + $0x28] sm:$0xff]  }
  0xa3   : > { %v699_v27 = vadd.f32 %v698_v15, %v681_v22  ;;  %v700_v28 = vadd.f32 %v698_v15, %v685_v23  ;;  %v1649_v30 = vsel %vm1600_vm9, %v532_v25, -1e+30  ;;  %v1655_v31 = vsel %vm1610_vm13, %v531_v26, -1e+30  ;;  %1333 = vmatprep.subr.bf16.mxu0 %v1410_v9  ;;  %1343 = vmatprep.subr.bf16.mxu1 %v1411_v10 }
  0xa4   : > { %538 = vmax.xlane.f32.xlu0 %v537_v29  ;;  %v546_v18 = vsel %vm355_vm7, %v1649_v30, -inf  ;;  %v543_v37 = vsel %vm355_vm7, %v1655_v31, -inf  ;;  %1344 = vmatpush3.bf16.msra.mxu1 %v1411_v10 }
  0xa5   : > { %v707_v33 = vmul.f32 0.2, %v699_v27  ;;  %v708_v34 = vmul.f32 0.2, %v700_v28  ;;  %547 = vmax.xlane.f32.xlu1 %v546_v18  ;;  %vm704_vm2 = vcmp.gt.f32.partialorder %v700_v28, 0.0  ;;  %vm703_vm3 = vcmp.gt.f32.partialorder %v699_v27, 0.0  ;;  %1334 = vmatpush3.bf16.msra.mxu0 %v1410_v9 }
  0xa6   : > { %v689_v35 = vpop.permute.xlu1 %688  ;;  %1335 = vmatprep.subr.bf16.mxu0 %v1412_v20  ;;  %1345 = vmatprep.subr.bf16.mxu1 %v1413_v21  ;;  %v1738_v18 = vld [vmem:[%s1877_s3 + $0x50] sm:$0xff]  }
  0xa7   : > { %v701_v36 = vadd.f32 %v698_v15, %v689_v35  ;;  %v863_v38 = vpop.permute.xlu0 %862  ;;  %v712_v39 = vsel %vm704_vm2, %v700_v28, %v708_v34  ;;  %v711_v41 = vsel %vm703_vm3, %v699_v27, %v707_v33  ;;  %v1414_v27 = vld [vmem:[%s1877_s3 + $0x20] sm:$0xff]   ;;  %v1415_v28 = vld [vmem:[%s1877_s3 + $0x38] sm:$0xff]  }
  0xa8   : > { %544 = vmax.xlane.f32.xlu0 %v543_v37  ;;  %v881_v42 = vadd.f32 %v880_v32, %v863_v38  ;;  %v1662_v43 = vsel %vm1604_vm10, %v712_v39, -1e+30  ;;  %v1666_v24 = vsel %vm1591_vm6, %v711_v41, -1e+30  ;;  %1346 = vmatpush3.bf16.msra.mxu1 %v1413_v21  ;;  %v1747_v33 = vld [vmem:[%s1877_s3 + $0x78] sm:$0xff]  }
  0xa9   : > { %v709_v44 = vmul.f32 0.2, %v701_v36  ;;  %v722_v45 = vsel %vm355_vm7, %v1662_v43, -inf  ;;  %vm705_vm4 = vcmp.gt.f32.partialorder %v701_v36, 0.0  ;;  %v719_v53 = vsel %vm355_vm7, %v1666_v24, -inf  ;;  %1336 = vmatpush3.bf16.msra.mxu0 %v1412_v20  ;;  %1347 = vmatprep.subr.bf16.mxu1 %v1415_v28 }
  0xaa   : > { %v889_v47 = vmul.f32 0.2, %v881_v42  ;;  %v693_v49 = vpop.permute.xlu1 %692  ;;  %723 = vmax.xlane.f32.xlu1 %v722_v45  ;;  %vm885_vm5 = vcmp.gt.f32.partialorder %v881_v42, 0.0  ;;  %1337 = vmatprep.subr.bf16.mxu0 %v1414_v27 }
  0xab   : > { %v702_v52 = vadd.f32 %v698_v15, %v693_v49  ;;  %v875_v54 = vpop.permute.xlu0 %874  ;;  %v713_v55 = vsel %vm705_vm4, %v701_v36, %v709_v44 }
  0xac   : > { %720 = vmax.xlane.f32.xlu0 %v719_v53  ;;  %v884_v57 = vadd.f32 %v880_v32, %v875_v54  ;;  %v1677_v58 = vsel %vm1610_vm13, %v713_v55, -1e+30  ;;  %v893_v59 = vsel %vm885_vm5, %v881_v42, %v889_v47  ;;  %1348 = vmatpush3.bf16.msra.mxu1 %v1415_v28 }
  0xad   : > { %v710_v60 = vmul.f32 0.2, %v702_v52  ;;  %vm706_vm8 = vcmp.gt.f32.partialorder %v702_v52, 0.0  ;;  %v1681_v61 = vsel %vm1591_vm6, %v893_v59, -1e+30  ;;  %v725_v2 = vsel %vm355_vm7, %v1677_v58, -inf  ;;  %1338 = vmatpush3.bf16.msra.mxu0 %v1414_v27  ;;  %1349 = vmatprep.subr.bf16.mxu1 %v1416_v56 }
  0xae   : > { %v892_v5 = vmul.f32 0.2, %v884_v57  ;;  %v901_v8 = vsel %vm355_vm7, %v1681_v61, -inf  ;;  %vm888_vm6 = vcmp.gt.f32.partialorder %v884_v57, 0.0  ;;  %1357 = vmatprep.subr.bf16.mxu0 %v1738_v18 }
  0xaf   : > { %v867_v1 = vpop.permute.xlu1 %866  ;;  %v714_v4 = vsel %vm706_vm8, %v702_v52, %v710_v60 }
  0xb0   : > { %v882_v6 = vadd.f32 %v880_v32, %v867_v1  ;;  %726 = vmax.xlane.f32.xlu0 %v725_v2  ;;  %v1690_v7 = vsel %vm1600_vm9, %v714_v4, -1e+30  ;;  %v896_v17 = vsel %vm888_vm6, %v884_v57, %v892_v5  ;;  %1350 = vmatpush3.bf16.msra.mxu1 %v1416_v56 }
  0xb1   : > { %v728_v40 = vsel %vm355_vm7, %v1690_v7, -inf  ;;  %v1716_v51 = vsel %vm1600_vm9, %v896_v17, -1e+30  ;;  %vm1101_vm9 = vcmask 195584  }
  0xb2   : > { %v890_v11 = vmul.f32 0.2, %v882_v6  ;;  %729 = vmax.xlane.f32.xlu1 %v728_v40  ;;  %vm886_vm11 = vcmp.gt.f32.partialorder %v882_v6, 0.0  ;;  %v910_v29 = vsel %vm355_vm7, %v1716_v51, -inf }
  0xb3   : > { %v871_v12 = vpop.permute.xlu1 %870 }
  0xb4   : > { %v883_v13 = vadd.f32 %v880_v32, %v871_v12  ;;  %902 = vmax.xlane.f32.xlu0 %v901_v8  ;;  %v894_v15 = vsel %vm886_vm11, %v882_v6, %v890_v11  ;;  %v1418_v32 = vld [vmem:[%s1877_s3 + $0x48] sm:$0xff]  }
  0xb5   : > { %v1704_v19 = vsel %vm1604_vm10, %v894_v15, -1e+30  ;;  %1351 = vmatprep.subr.bf16.mxu1 %v1418_v32  ;;  %vm1096_vm10 = vcmask 130048  }
  0xb6   : > { %v891_v22 = vmul.f32 0.2, %v883_v13  ;;  %v904_v23 = vsel %vm355_vm7, %v1704_v19, -inf  ;;  %vm887_vm12 = vcmp.gt.f32.partialorder %v883_v13, 0.0  ;;  %1352 = vmatpush3.bf16.msra.mxu1 %v1418_v32 }
  0xb7   : > { %905 = vmax.xlane.f32.xlu1 %v904_v23  ;;  %1371 = vmatprep.subr.bf16.mxu1 %v1747_v33 }
  0xb8   : > { %v895_v25 = vsel %vm887_vm12, %v883_v13, %v891_v22 }
  0xb9   : > { %v1720_v26 = vsel %vm1610_vm13, %v895_v25, -1e+30  ;;  %vm1152_vm13 = vcmask 261120  }
  0xba   : > { %v907_v50 = vsel %vm355_vm7, %v1720_v26, -inf }
  0xbb   : > { %908 = vmax.xlane.f32.xlu0 %v907_v50  ;;  %911 = vmax.xlane.f32.xlu1 %v910_v29 }
 0x125   : > { %v358_v34 = vpop.xlane.xlu1 %357 }
 0x126   : > { %v368_v35 = vsub.f32 %v1597_v48, %v358_v34 }
 0x128   : > { %v372_v38 = vmul.f32 1.442695, %v368_v35  ;;  %v1423_v35 = vld [vmem:[%s1877_s3 + $0x80] sm:$0xff]  }
 0x129   : > { %v367_v36 = vpop.xlane.xlu1 %366  ;;  %v361_v37 = vpop.xlane.xlu0 %360 }
 0x12a   : > { %v371_v39 = vsub.f32 %v1616_v63, %v367_v36  ;;  %v369_v41 = vsub.f32 %v1620_v0, %v361_v37  ;;  %1428 = vpow2.f32 %v372_v38 }
 0x12c   : > { %v374_v42 = vmul.f32 1.442695, %v369_v41  ;;  %v378_v44 = vmul.f32 1.442695, %v371_v39 }
 0x12d   : > { %v364_v45 = vpop.xlane.xlu0 %363 }
 0x12e   : > { %v370_v46 = vsub.f32 %v1628_v3, %v364_v45  ;;  %v542_v47 = vpop.xlane.xlu1 %541  ;;  %1430 = vpow2.f32 %v374_v42  ;;  %v1424_v45 = vld [vmem:[%s1877_s3 + $0x70] sm:$0xff]  }
 0x12f   : > { %v550_v49 = vsub.f32 %v1635_v14, %v542_v47  ;;  %1432 = vpow2.f32 %v378_v44 }
 0x130   : > { %v376_v52 = vmul.f32 1.442695, %v370_v46 }
 0x131   : > { %v555_v48 = vmul.f32 1.442695, %v550_v49  ;;  %v539_v53 = vpop.xlane.xlu0 %538 }
 0x132   : > { %1434 = vpow2.f32 %v376_v52  ;;  %v549_v54 = vsub.f32 %v1640_v16, %v539_v53  ;;  %v548_v63 = vpop.xlane.xlu1 %547 }
 0x133   : > { %1436 = vpow2.f32 %v555_v48  ;;  %v552_v0 = vsub.f32 %v1649_v30, %v548_v63  ;;  %v1426_v48 = vld [vmem:[%s1877_s3 + $0x90] sm:$0xff]  }
 0x134   : > { %v553_v55 = vmul.f32 1.442695, %v549_v54  ;;  %v1758_v14 = vpop.eup %1428 }
 0x135   : > { %v559_v57 = vmul.f32 1.442695, %v552_v0  ;;  %v545_v59 = vpop.xlane.xlu0 %544 }
 0x136   : > { %1438 = vpow2.f32 %v553_v55  ;;  %v551_v3 = vsub.f32 %v1655_v31, %v545_v59  ;;  %v1427_v55 = vld [vmem:[%s1877_s3 + $0x98] sm:$0xff]  }
 0x137   : > { %1440 = vpow2.f32 %v559_v57  ;;  %v724_v60 = vpop.xlane.xlu1 %723 }
 0x138   : > { %v557_v62 = vmul.f32 1.442695, %v551_v3  ;;  %v732_v1 = vsub.f32 %v1662_v43, %v724_v60  ;;  %v1761_v2 = vpop.eup %1430 }
 0x139   : > { %v721_v16 = vpop.xlane.xlu0 %720  ;;  %v392_v5 = vpack.c.bf16 %v1761_v2, %v1758_v14  ;;  %v1766_v6 = vpop.eup %1432 }
 0x13a   : > { %1442 = vpow2.f32 %v557_v62  ;;  %v737_v4 = vmul.f32 1.442695, %v732_v1  ;;  %v731_v30 = vsub.f32 %v1666_v24, %v721_v16  ;;  %v1419_v24 = vld [vmem:[%s1877_s3 + $0x58] sm:$0xff]  }
 0x13b   : > { %1339 = vmatprep.mubr.msk.bf16.mxu0 %vm355_vm7, %v392_v5  ;;  %v380_v5 = vsel %vm355_vm7, %v1758_v14, 0.0 }
 0x13c   : > { %v1768_v31 = vpop.eup %1434  ;;  %1444 = vpow2.f32 %v737_v4  ;;  %v735_v40 = vmul.f32 1.442695, %v731_v30  ;;  %v383_v30 = vsel %vm355_vm7, %v1761_v2, 0.0 }
 0x13d   : > { %v1437_v8 = vpop.eup %1436  ;;  %v727_v43 = vpop.xlane.xlu0 %726  ;;  %v393_v9 = vpack.c.bf16 %v1766_v6, %v1768_v31 }
 0x13e   : > { %1446 = vpow2.f32 %v735_v40  ;;  %v733_v10 = vsub.f32 %v1677_v58, %v727_v43  ;;  %v564_v11 = vsel %vm355_vm7, %v1437_v8, 0.0  ;;  %v1420_v58 = vld [vmem:[%s1877_s3 + $0x60] sm:$0xff]   ;;  %v389_v40 = vsel %vm355_vm7, %v1766_v6, 0.0 }
 0x13f   : > { %v730_v12 = vpop.xlane.xlu1 %729  ;;  %565 = vadd.xlane.f32.xlu1 %v564_v11  ;;  %1340 = vmatmul.mubr.msk.bf16.vlgmr.msra.gmra.mrb[0].mxu0 %vm355_vm7, %v393_v9 }
 0x140   : > { %v1439_v13 = vpop.eup %1438  ;;  %v739_v15 = vmul.f32 1.442695, %v733_v10  ;;  %v734_v17 = vsub.f32 %v1690_v7, %v730_v12  ;;  %1358 = vmatpush3.bf16.msra.mxu0 %v1738_v18 }
 0x141   : > { %v1441_v20 = vpop.eup %1440  ;;  %v903_v21 = vpop.xlane.xlu0 %902  ;;  %1359 = vmatprep.subr.bf16.mxu0 %v1419_v24  ;;  %v561_v22 = vsel %vm355_vm7, %v1439_v13, 0.0  ;;  %v573_v23 = vpack.c.bf16 %v1437_v8, %v1439_v13  ;;  %v386_v8 = vsel %vm355_vm7, %v1768_v31, 0.0 }
 0x142   : > { %1448 = vpow2.f32 %v739_v15  ;;  %v741_v25 = vmul.f32 1.442695, %v734_v17  ;;  %v913_v27 = vsub.f32 %v1681_v61, %v903_v21  ;;  %562 = vadd.xlane.f32.xlu0 %v561_v22  ;;  %v570_v28 = vsel %vm355_vm7, %v1441_v20, 0.0  ;;  %v1422_v61 = vld [vmem:[%s1877_s3 + $0x68] sm:$0xff]  }
 0x143   : > { %571 = vadd.xlane.f32.xlu1 %v570_v28  ;;  %1353 = vmatprep.mubr.msk.bf16.mxu1 %vm355_vm7, %v573_v23 }
 0x144   : > { %v1443_v7 = vpop.eup %1442  ;;  %1450 = vpow2.f32 %v741_v25  ;;  %v917_v50 = vmul.f32 1.442695, %v913_v27  ;;  %1360 = vmatpush3.bf16.msra.mxu0 %v1419_v24  ;;  %v906_v29 = vpop.xlane.xlu1 %905 }
 0x145   : > { %v914_v56 = vsub.f32 %v1704_v19, %v906_v29  ;;  %1361 = vmatprep.subr.bf16.mxu0 %v1420_v58  ;;  %v567_v18 = vsel %vm355_vm7, %v1443_v7, 0.0  ;;  %v574_v32 = vpack.c.bf16 %v1441_v20, %v1443_v7 }
 0x146   : > { %v1445_v34 = vpop.eup %1444  ;;  %1452 = vpow2.f32 %v917_v50  ;;  %568 = vadd.xlane.f32.xlu0 %v567_v18 }
 0x147   : > { %v919_v36 = vmul.f32 1.442695, %v914_v56  ;;  %1354 = vmatmul.mubr.msk.bf16.vlgmr.msra.gmra.mrb[0].mxu1 %vm355_vm7, %v574_v32  ;;  %v746_v19 = vsel %vm355_vm7, %v1445_v34, 0.0 }
 0x148   : > { %v1447_v37 = vpop.eup %1446  ;;  %1362 = vmatpush3.bf16.msra.mxu0 %v1420_v58  ;;  %1372 = vmatpush3.bf16.msra.mxu1 %v1747_v33  ;;  %v912_v38 = vpop.xlane.xlu1 %911  ;;  %v1425_v33 = vld [vmem:[%s1877_s3 + $0x88] sm:$0xff]  }
 0x149   : > { %v909_v39 = vpop.xlane.xlu0 %908  ;;  %1454 = vpow2.f32 %v919_v36  ;;  %747 = vadd.xlane.f32.xlu1 %v746_v19  ;;  %v916_v41 = vsub.f32 %v1716_v51, %v912_v38  ;;  %1363 = vmatprep.subr.bf16.mxu0 %v1422_v61  ;;  %v743_v44 = vsel %vm355_vm7, %v1447_v37, 0.0  ;;  %v755_v46 = vpack.c.bf16 %v1445_v34, %v1447_v37 }
 0x14a   : > { %v915_v42 = vsub.f32 %v1720_v26, %v909_v39  ;;  %1373 = vmatprep.subr.bf16.mxu1 %v1423_v35  ;;  %744 = vadd.xlane.f32.xlu0 %v743_v44 }
 0x14b   : > { %v923_v47 = vmul.f32 1.442695, %v916_v41  ;;  %1367 = vmatprep.mubr.msk.bf16.mxu0 %vm355_vm7, %v755_v46 }
 0x14c   : > { %v921_v49 = vmul.f32 1.442695, %v915_v42  ;;  %v1449_v52 = vpop.eup %1448  ;;  %1364 = vmatpush3.bf16.msra.mxu0 %v1422_v61  ;;  %1374 = vmatpush3.bf16.msra.mxu1 %v1423_v35 }
 0x14d   : > { %1456 = vpow2.f32 %v923_v47  ;;  %1365 = vmatprep.subr.bf16.mxu0 %v1424_v45  ;;  %v749_v51 = vsel %vm355_vm7, %v1449_v52, 0.0  ;;  %1375 = vmatprep.subr.bf16.mxu1 %v1425_v33 }
 0x14e   : > { %v1451_v26 = vpop.eup %1450  ;;  %1458 = vpow2.f32 %v921_v49  ;;  %750 = vadd.xlane.f32.xlu0 %v749_v51 }
 0x14f   : > { %v752_v53 = vsel %vm355_vm7, %v1451_v26, 0.0  ;;  %v756_v54 = vpack.c.bf16 %v1451_v26, %v1449_v52 }
 0x150   : > { %v1453_v63 = vpop.eup %1452  ;;  %1366 = vmatpush3.bf16.msra.mxu0 %v1424_v45  ;;  %753 = vadd.xlane.f32.xlu1 %v752_v53 }
 0x151   : > { %1376 = vmatpush3.bf16.msra.mxu1 %v1425_v33  ;;  %v925_v0 = vsel %vm355_vm7, %v1453_v63, 0.0 }
 0x152   : > { %1377 = vmatprep.subr.bf16.mxu1 %v1426_v48  ;;  %926 = vadd.xlane.f32.xlu0 %v925_v0 }
 0x153   : > { %v1455_v57 = vpop.eup %1454  ;;  %1368 = vmatmul.mubr.msk.bf16.vlgmr.msra.gmra.mrb[4].mxu0 %vm355_vm7, %v756_v54 }
 0x154   : > { %v928_v59 = vsel %vm355_vm7, %v1455_v57, 0.0  ;;  %v937_v3 = vpack.c.bf16 %v1455_v57, %v1453_v63 }
 0x155   : > { %1378 = vmatpush3.bf16.msra.mxu1 %v1426_v48  ;;  %929 = vadd.xlane.f32.xlu1 %v928_v59 }
 0x156   : > { %1379 = vmatprep.subr.bf16.mxu1 %v1427_v55  ;;  %1381 = vmatprep.mubr.msk.bf16.mxu1 %vm355_vm7, %v937_v3 }
 0x157   : > { %v1457_v60 = vpop.eup %1456 }
 0x158   : > { %v1459_v62 = vpop.eup %1458  ;;  %v934_v1 = vsel %vm355_vm7, %v1457_v60, 0.0 }
 0x159   : > { %1380 = vmatpush3.bf16.msra.mxu1 %v1427_v55  ;;  %935 = vadd.xlane.f32.xlu1 %v934_v1  ;;  %v931_v16 = vsel %vm355_vm7, %v1459_v62, 0.0  ;;  %v938_v4 = vpack.c.bf16 %v1457_v60, %v1459_v62 }
 0x15a   : > { %932 = vadd.xlane.f32.xlu0 %v931_v16 }
 0x15c   : > { %1382 = vmatmul.mubr.msk.bf16.vlgmr.msra.gmra.mrb[4].mxu1 %vm355_vm7, %v938_v4  ;;  %vm1091_vm7 = vcmask 64512  }
 0x15d   : > { %384 = vadd.xlane.f32.xlu1 %v383_v30 }
 0x15e   : > { %381 = vadd.xlane.f32.xlu0 %v380_v5 }
 0x161   : > { %390 = vadd.xlane.f32.xlu1 %v389_v40 }
 0x162   : > { %387 = vadd.xlane.f32.xlu0 %v386_v8 }
 0x1cc   : > { %v566_v9 = vpop.xlane.xlu1 %565 }
 0x1cf   : > { %v563_v43 = vpop.xlane.xlu0 %562 }
 0x1d0   : > { %v572_v10 = vpop.xlane.xlu1 %571 }
 0x1d3   : > { %v569_v24 = vpop.xlane.xlu0 %568 }
 0x1d4   : > { %1460 = vrcp.f32 %v569_v24 }
 0x1d5   : > { %1462 = vrcp.f32 %v563_v43 }
 0x1d6   : > { %1464 = vrcp.f32 %v566_v9  ;;  %v748_v13 = vpop.xlane.xlu1 %747 }
 0x1d7   : > { %v745_v11 = vpop.xlane.xlu0 %744  ;;  %1466 = vrcp.f32 %v572_v10 }
 0x1db   : > { %v751_v31 = vpop.xlane.xlu0 %750 }
 0x1dc   : > { %1468 = vrcp.f32 %v751_v31 }
 0x1dd   : > { %v754_v21 = vpop.xlane.xlu1 %753 }
 0x1de   : > { %v1461_v15 = vpop.eup %1460  ;;  %1470 = vrcp.f32 %v754_v21 }
 0x1df   : > { %v1463_v20 = vpop.eup %1462  ;;  %1472 = vrcp.f32 %v745_v11  ;;  %v927_v56 = vpop.xlane.xlu0 %926 }
 0x1e0   : > { %v1465_v27 = vpop.eup %1464  ;;  %1474 = vrcp.f32 %v748_v13  ;;  %v1293_v13 = vld [vmem:[%s1878_s4] ss:$0 sm:$0xff] }
 0x1e1   : > { %v1467_v50 = vpop.eup %1466  ;;  %1476 = vrcp.f32 %v927_v56 }
 0x1e2   : > { %v930_v18 = vpop.xlane.xlu1 %929 }
 0x1e3   : > { %1478 = vrcp.f32 %v930_v18 }
 0x1e6   : > { %v1469_v32 = vpop.eup %1468  ;;  %v936_v38 = vpop.xlane.xlu1 %935 }
 0x1e7   : > { %v933_v34 = vpop.xlane.xlu0 %932 }
 0x1e8   : > { %v1471_v19 = vpop.eup %1470  ;;  %1480 = vrcp.f32 %v933_v34 }
 0x1e9   : > { %v1473_v42 = vpop.eup %1472  ;;  %1482 = vrcp.f32 %v936_v38 }
 0x1ea   : > { %v1475_v45 = vpop.eup %1474  ;;  %v385_v57 = vpop.xlane.xlu1 %384 }
 0x1eb   : > { %v1477_v47 = vpop.eup %1476  ;;  %v382_v59 = vpop.xlane.xlu0 %381 }
 0x1ec   : > { %1484 = vrcp.f32 %v382_v59 }
 0x1ed   : > { %v1479_v26 = vpop.eup %1478  ;;  %1486 = vrcp.f32 %v385_v57 }
 0x1ee   : > { %v391_v3 = vpop.xlane.xlu1 %390 }
 0x1ef   : > { %v388_v60 = vpop.xlane.xlu0 %387 }
 0x1f0   : > { %1488 = vrcp.f32 %v388_v60 }
 0x1f1   : > { %1490 = vrcp.f32 %v391_v3 }
 0x1f2   : > { %v1481_v54 = vpop.eup %1480 }
 0x1f3   : > { %v1483_v0 = vpop.eup %1482 }
 0x1f6   : > { %v1485_v8 = vpop.eup %1484 }
 0x1f7   : > { %v1487_v24 = vpop.eup %1486 }
 0x1fa   : > { %v1489_v31 = vpop.eup %1488 }
 0x212   : > { %v1832_v2 = vpop.f32.mrb[0].mxu0 }
 0x213   : > { %v1834_v14 = vpop.f32.mrb[1].mxu0 }
 0x214   : > { %v1836_v12 = vpop.f32.mrb[2].mxu0  ;;  %v493_v9 = vmul.f32 %v1485_v8, %v1834_v14  ;;  %v1294_v14 = vld [vmem:[%s1879_s5] ss:$0 sm:$0xff] }
 0x215   : > { %v1838_v6 = vpop.f32.mrb[3].mxu0 }
 0x216   : > { %v494_v10 = vmul.f32 %v1487_v24, %v1838_v6 }
 0x21a   : > { %v1355_v17 = vpop.f32.mrb[0].mxu1 }
 0x21b   : > { %v677_v22 = vmul.f32 %v1461_v15, %v1355_v17  ;;  %v656_v23 = vpop.f32.mrb[1].mxu1 }
 0x21c   : > { %v675_v58 = vmul.f32 %v1463_v20, %v656_v23  ;;  %v1356_v25 = vpop.f32.mrb[2].mxu1  ;;  %v495_v20 = vmul.f32 %v1489_v31, %v1832_v2 }
 0x21d   : > { %v659_v28 = vpop.f32.mrb[3].mxu1  ;;  %1051 = vrot.lane.b32.xlu1 %v677_v22, %s1512_s8  ;;  %v678_v29 = vmul.f32 %v1467_v50, %v1356_v25  ;;  %v1491_v22 = vpop.eup %1490 }
 0x21e   : > { %v676_v7 = vmul.f32 %v1465_v27, %v659_v28  ;;  %1047 = vrot.lane.b32.xlu0 %v675_v58, %s1512_s8  ;;  %v496_v27 = vmul.f32 %v1491_v22, %v1836_v12 }
 0x221   : > { %1049 = vrot.lane.b32.xlu1 %v676_v7, %s1512_s8 }
 0x222   : > { %1053 = vrot.lane.b32.xlu0 %v678_v29, %s1512_s8 }
 0x226   : > { %v1369_v61 = vpop.f32.mrb[4].mxu0 }
 0x227   : > { %v859_v35 = vmul.f32 %v1469_v32, %v1369_v61  ;;  %v838_v36 = vpop.f32.mrb[5].mxu0 }
 0x228   : > { %v1370_v37 = vpop.f32.mrb[6].mxu0  ;;  %v857_v44 = vmul.f32 %v1473_v42, %v838_v36 }
 0x229   : > { %v860_v39 = vmul.f32 %v1471_v19, %v1370_v37  ;;  %v841_v41 = vpop.f32.mrb[7].mxu0  ;;  %1067 = vrot.lane.b32.xlu1 %v859_v35, %s1513_s9 }
 0x22a   : > { %v858_v46 = vmul.f32 %v1475_v45, %v841_v41 }
 0x22b   : > { %1069 = vrot.lane.b32.xlu0 %v860_v39, %s1513_s9 }
 0x22d   : > { %1063 = vrot.lane.b32.xlu1 %v857_v44, %s1513_s9 }
 0x22f   : > { %v1383_v33 = vpop.f32.mrb[4].mxu1  ;;  %1065 = vrot.lane.b32.xlu0 %v858_v46, %s1513_s9 }
 0x230   : > { %v1020_v49 = vpop.f32.mrb[5].mxu1  ;;  %v1041_v63 = vmul.f32 %v1481_v54, %v1383_v33 }
 0x231   : > { %v1039_v52 = vmul.f32 %v1477_v47, %v1020_v49  ;;  %v1384_v51 = vpop.f32.mrb[6].mxu1 }
 0x232   : > { %v1023_v48 = vpop.f32.mrb[7].mxu1  ;;  %v1042_v55 = vmul.f32 %v1483_v0, %v1384_v51 }
 0x233   : > { %v1040_v53 = vmul.f32 %v1479_v26, %v1023_v48  ;;  %1079 = vrot.lane.b32.xlu1 %v1039_v52, %s1514_s10 }
 0x235   : > { %1081 = vrot.lane.b32.xlu0 %v1040_v53, %s1514_s10 }
 0x237   : > { %1083 = vrot.lane.b32.xlu1 %v1041_v63, %s1514_s10 }
 0x239   : > { %1085 = vrot.lane.b32.xlu0 %v1042_v55, %s1514_s10 }
 0x28f   : > { %v1052_v62 = vpop.permute.xlu1 %1051 }
 0x290   : > { %v1048_v1 = vpop.permute.xlu0 %1047  ;;  %v1094_v28 = vsel %vm1091_vm7, %v495_v20, %v1052_v62 }
 0x291   : > { %v1092_v11 = vsel %vm1091_vm7, %v493_v9, %v1048_v1 }
 0x293   : > { %v1050_v16 = vpop.permute.xlu1 %1049 }
 0x294   : > { %v1054_v4 = vpop.permute.xlu0 %1053  ;;  %v1093_v21 = vsel %vm1091_vm7, %v494_v10, %v1050_v16 }
 0x295   : > { %v1095_v18 = vsel %vm1091_vm7, %v496_v27, %v1054_v4 }
 0x29b   : > { %v1068_v30 = vpop.permute.xlu1 %1067 }
 0x29c   : > { %v1099_v2 = vsel %vm1096_vm10, %v1094_v28, %v1068_v30 }
 0x29d   : > { %v1070_v5 = vpop.permute.xlu0 %1069 }
 0x29e   : > { %v1100_v61 = vsel %vm1096_vm10, %v1095_v18, %v1070_v5 }
 0x29f   : > { %v1064_v40 = vpop.permute.xlu1 %1063 }
 0x2a0   : > { %v1097_v15 = vsel %vm1096_vm10, %v1092_v11, %v1064_v40 }
 0x2a1   : > { %v1066_v43 = vpop.permute.xlu0 %1065 }
 0x2a2   : > { %v1098_v23 = vsel %vm1096_vm10, %v1093_v21, %v1066_v43 }
 0x2a5   : > { %v1080_v17 = vpop.permute.xlu1 %1079 }
 0x2a6   : > { %v1102_v6 = vsel %vm1101_vm9, %v1097_v15, %v1080_v17 }
 0x2a7   : > { %v1113_v58 = vmul.f32 %v1293_v13, %v1102_v6  ;;  %v1082_v25 = vpop.permute.xlu0 %1081 }
 0x2a8   : > { %v1103_v7 = vsel %vm1101_vm9, %v1098_v23, %v1082_v25 }
 0x2a9   : > { %v1124_v50 = vadd.f32 %v1294_v14, %v1113_v58  ;;  %v1114_v29 = vmul.f32 %v1293_v13, %v1103_v7  ;;  %v1084_v56 = vpop.permute.xlu1 %1083 }
 0x2aa   : > { %v1104_v32 = vsel %vm1101_vm9, %v1099_v2, %v1084_v56 }
 0x2ab   : > { %v1132_v34 = vmin.f32 %v1124_v50, 0.0  ;;  %v1125_v35 = vadd.f32 %v1294_v14, %v1114_v29  ;;  %v1115_v36 = vmul.f32 %v1293_v13, %v1104_v32  ;;  %v1086_v19 = vpop.permute.xlu0 %1085  ;;  %vm1128_vm14 = vcmp.gt.f32.partialorder %v1124_v50, 0.0 }
 0x2ac   : > { %v1105_v12 = vsel %vm1101_vm9, %v1100_v61, %v1086_v19 }
 0x2ad   : > { %v1136_v37 = vmul.f32 1.442695, %v1132_v34  ;;  %v1133_v38 = vmin.f32 %v1125_v35, 0.0  ;;  %v1126_v39 = vadd.f32 %v1294_v14, %v1115_v36  ;;  %v1116_v41 = vmul.f32 %v1293_v13, %v1105_v12 }
 0x2ae   : > { %vm1129_vm15 = vcmp.gt.f32.partialorder %v1125_v35, 0.0 }
 0x2af   : > { %1492 = vpow2.f32 %v1136_v37  ;;  %v1138_v42 = vmul.f32 1.442695, %v1133_v38  ;;  %v1134_v44 = vmin.f32 %v1126_v39, 0.0  ;;  %v1127_v45 = vadd.f32 %v1294_v14, %v1116_v41 }
 0x2b0   : > { %vm1130_vm0 = vcmp.gt.f32.partialorder %v1126_v39, 0.0 }
 0x2b1   : > { %1494 = vpow2.f32 %v1138_v42  ;;  %v1140_v46 = vmul.f32 1.442695, %v1134_v44  ;;  %v1135_v33 = vmin.f32 %v1127_v45, 0.0  ;;  %vm1131_vm1 = vcmp.gt.f32.partialorder %v1127_v45, 0.0 }
 0x2b3   : > { %1496 = vpow2.f32 %v1140_v46  ;;  %v1142_v47 = vmul.f32 1.442695, %v1135_v33 }
 0x2b5   : > { %1498 = vpow2.f32 %v1142_v47 }
 0x2b9   : > { %v1493_v49 = vpop.eup %1492 }
 0x2ba   : > { %v1295_v52 = vadd.f32 -1.0, %v1493_v49 }
 0x2bb   : > { %v1495_v51 = vpop.eup %1494 }
 0x2bc   : > { %v1148_v26 = vsel %vm1128_vm14, %v1124_v50, %v1295_v52  ;;  %v1296_v48 = vadd.f32 -1.0, %v1495_v51 }
 0x2bd   : > { %v1497_v53 = vpop.eup %1496  ;;  %1153 = vst.msk [vmem:[%s270_s17] sm:$0xff] %vm1152_vm13, %v1148_v26 }
 0x2be   : > { %v1149_v54 = vsel %vm1129_vm15, %v1125_v35, %v1296_v48  ;;  %v1297_v63 = vadd.f32 -1.0, %v1497_v53 }
 0x2bf   : > { %1154 = vst.msk [vmem:[%s270_s17 + $0x8] sm:$0xff] %vm1152_vm13, %v1149_v54  ;;  %v1499_v0 = vpop.eup %1498 }
 0x2c0   : > { %v1150_v55 = vsel %vm1130_vm0, %v1126_v39, %v1297_v63  ;;  %v1298_v57 = vadd.f32 -1.0, %v1499_v0 }
 0x2c1   : > { %1155 = vst.msk [vmem:[%s270_s17 + $0x10] sm:$0xff] %vm1152_vm13, %v1150_v55 }
 0x2c2   : > { %v1151_v59 = vsel %vm1131_vm1, %v1127_v45, %v1298_v57 }
 0x2c3   : > { %1156 = vst.msk [vmem:[%s270_s17 + $0x18] sm:$0xff] %vm1152_vm13, %v1151_v59 }
 0x2c4 PF: > { %s16_s21 = sadd.s32 1, %s1506_s21  }
 0x2c5   : > { %p13_p5 = scmp.ge.s32.totalorder %s16_s21, 5  }
 0x2c7   :  { %15 = sbr.rel (!%p13_p5) target bundleno = 1 (0x1), region = 80 }

</bundles_post_ra>
